<compile_context>
chip_gen: v7x
topology: tpu7x:2x2x1
jax: 0.10.0
libtpu: 0.0.40
codegen_flags: <defaults>
</compile_context>

<pallas_src>
import jax
import jax.numpy as jnp
from jax.experimental import pallas as pl
from jax.experimental.pallas import tpu as pltpu


def _leaky_relu(v, slope=0.2):
    return jnp.where(v > 0, v, slope * v)


def _round_up(a, b):
    return ((a + b - 1) // b) * b


def make_icnn_kernel(n_hidden, u_pad):
    """Ref order: x, A_stacked, b_stacked, W_1..W_{n-1}, w_last, a_last, b_last, out."""
    n_mid = n_hidden - 1

    def kernel(x_ref, a_all_ref, b_all_ref, *rest):
        w_refs = rest[:n_mid]
        wlast_ref, alast_ref, blast_ref, out_ref = rest[n_mid:]

        x = x_ref[...]

        # All A_i(x) (+ bias) for layers 0..n_hidden-1 in ONE wide matmul.
        ax = (jnp.dot(x, a_all_ref[...], preferred_element_type=jnp.float32)
              + b_all_ref[...])

        # z = LeakyReLU(A0 x + b0); z = z*z   (128-aligned lane slice, free)
        z = _leaky_relu(ax[:, :u_pad[0]])
        z = z * z

        # Hidden layers: z = LeakyReLU(z @ W_i + A_i(x))
        off = u_pad[0]
        for i in range(n_mid):
            w_ref = w_refs[i]
            pre = (jnp.dot(z.astype(w_ref.dtype), w_ref[...],
                           preferred_element_type=jnp.float32)
                   + ax[:, off:off + u_pad[i + 1]])
            z = _leaky_relu(pre)
            off += u_pad[i + 1]

        # Final layer has a single logical output column:
        # y = z . w_last + x . a_last + b_last   (VPU multiply + lane reduce,
        # produces the narrow (tile_b, 1) result directly -> tiny HBM writeback)
        acc = jnp.sum(z * wlast_ref[...], axis=-1, keepdims=True)
        acc = acc + jnp.sum(x.astype(jnp.float32) * alast_ref[...],
                            axis=-1, keepdims=True)
        out_ref[...] = (acc + blast_ref[...]).astype(out_ref.dtype)

    return kernel


def icnn_forward_pallas(x, A_params, W_params, *, compute_dtype=None, tile_b=None,
                        softplus_W_kernels=False, softplus_beta=1.0):
    """x: (B, D).  A_params: list of (w_(D,odim), b_(1,odim)).  W_params: list of (in,out)."""
    n_hidden = len(W_params)
    assert n_hidden >= 1, "ICNN needs at least one hidden layer"
    B, D = x.shape
    units = [w.shape[1] for (w, _) in A_params]          # hidden_units + [1]
    assert units[-1] == 1 and len(units) == n_hidden + 1
    hidden = units[:-1]
    u_pad = tuple(_round_up(u, 128) for u in hidden)

    if compute_dtype is None:
        compute_dtype = x.dtype
    compute_dtype = jnp.dtype(compute_dtype)

    if softplus_W_kernels:
        W_params = [jax.nn.softplus(softplus_beta * w) / softplus_beta for w in W_params]

    # ---- stacked A weights / biases for layers 0..n_hidden-1 (one wide matmul) ----
    tot_n = sum(u_pad)
    a_all = jnp.zeros((D, tot_n), compute_dtype)
    b_all = jnp.zeros((1, tot_n), jnp.float32)
    off = 0
    for i in range(n_hidden):
        aw, ab = A_params[i]
        a_all = a_all.at[:, off:off + hidden[i]].set(aw.astype(compute_dtype))
        b_all = b_all.at[:, off:off + hidden[i]].set(ab.astype(jnp.float32))
        off += u_pad[i]

    # ---- padded mid W matrices (layers 1..n_hidden-1); zero pad is exact ----
    w_mid = []
    for i in range(n_hidden - 1):
        w = W_params[i]                                   # (hidden[i], hidden[i+1])
        wp = jnp.zeros((u_pad[i], u_pad[i + 1]), compute_dtype)
        wp = wp.at[:hidden[i], :hidden[i + 1]].set(w.astype(compute_dtype))
        w_mid.append(wp)

    # ---- final layer (single output column) -> row vectors for the VPU reduce ----
    w_last = W_params[-1]                                 # (hidden[-1], 1)
    a_last_w, a_last_b = A_params[-1]                     # (D, 1), (1, 1)
    wlast = jnp.zeros((1, u_pad[-1]), jnp.float32)
    wlast = wlast.at[:, :hidden[-1]].set(w_last[:, 0].astype(jnp.float32)[None, :])
    alast = a_last_w[:, 0].astype(jnp.float32)[None, :]   # (1, D)
    blast = a_last_b.astype(jnp.float32).reshape(1, 1)    # (1, 1)

    # ---- batch tiling: x stays lane-unpadded (last dim = D) in HBM ----
    sub = 8 if compute_dtype.itemsize >= 4 else 16        # sublane multiple per dtype
    if tile_b is None:
        if B <= 2 * sub:
            tile_b = _round_up(B, sub)
        else:
            # aim for >=2 grid steps so v7x's two TensorCores both get work
            tile_b = min(1024, _round_up(-(-B // 2), sub))
    B_p = _round_up(B, tile_b)
    x_c = x.astype(compute_dtype)
    if B_p != B:
        x_c = jnp.zeros((B_p, D), compute_dtype).at[:B].set(x_c)

    grid = (B_p // tile_b,)
    const = lambda i: (0, 0)   # weights stay VMEM-resident across grid steps

    in_specs = [pl.BlockSpec((tile_b, D), lambda i: (i, 0)),
                pl.BlockSpec(a_all.shape, const),
                pl.BlockSpec(b_all.shape, const)]
    in_specs += [pl.BlockSpec(w.shape, const) for w in w_mid]
    in_specs += [pl.BlockSpec(wlast.shape, const),
                 pl.BlockSpec(alast.shape, const),
                 pl.BlockSpec(blast.shape, const)]
    out_specs = pl.BlockSpec((tile_b, 1), lambda i: (i, 0))   # narrow, unpadded output

    out = pl.pallas_call(
        make_icnn_kernel(n_hidden, u_pad),
        out_shape=jax.ShapeDtypeStruct((B_p, 1), jnp.float32),
        grid=grid,
        in_specs=in_specs,
        out_specs=out_specs,
        compiler_params=pltpu.CompilerParams(
            dimension_semantics=("parallel",),
        ),
    )(x_c, a_all, b_all, *w_mid, wlast, alast, blast)

    return out[:B]


def icnn_forward_ref(x, A_params, W_params):
    """Pure-JAX reference mirroring the PyTorch forward."""
    n_hidden = len(W_params)

    def A(i):
        w, b = A_params[i]
        return x @ w + b

    z = _leaky_relu(A(0))
    z = z * z
    for i in range(1, n_hidden):
        z = _leaky_relu(z @ W_params[i - 1] + A(i))
    return z @ W_params[n_hidden - 1] + A(n_hidden)


def init_icnn_params(key, input_dim, hidden_units, std=0.1):
    """Synthetic init matching ICNN.__init__ shapes.

    units = hidden_units + [1]
    W[i]: (units[i], units[i+1]) (transposed vs torch), no bias, clamped >= 0
    A[i]: weight (input_dim, units[i]) (transposed), bias (1, units[i])
    """
    units = list(hidden_units) + [1]
    A_params, W_params = [], []
    for odim in units:
        key, kw = jax.random.split(key)
        w = (std * jax.random.normal(kw, (input_dim, odim))).astype(jnp.float32)
        b = jnp.zeros((1, odim), jnp.float32)
        A_params.append((w, b))
    for idim, odim in zip(units[:-1], units[1:]):
        key, kw = jax.random.split(key)
        # clamp_w() semantics: W kernels non-negative at init
        w = jnp.abs(std * jax.random.normal(kw, (idim, odim))).astype(jnp.float32)
        W_params.append(w)
    return A_params, W_params


if __name__ == "__main__":
    batch = 8
    input_dim = 16
    hidden_units = [32, 32]

    key = jax.random.PRNGKey(0)
    key, kx = jax.random.split(key)
    x = jax.random.normal(kx, (batch, input_dim), dtype=jnp.float32)

    A_params, W_params = init_icnn_params(key, input_dim, hidden_units)

    y_ref = icnn_forward_ref(x, A_params, W_params)

    # f32 path: exact vs the JAX/PyTorch-equivalent reference.
    y = jax.block_until_ready(icnn_forward_pallas(x, A_params, W_params))
    assert y.shape == (batch, 1)
    assert jnp.allclose(y, y_ref, atol=1e-5, rtol=1e-5), "f32 mismatch vs JAX reference"

    # bf16 MXU-operand path (production config): loose tolerance vs f32 reference.
    y_bf16 = jax.block_until_ready(
        icnn_forward_pallas(x, A_params, W_params, compute_dtype=jnp.bfloat16))
    assert y_bf16.shape == (batch, 1)
    assert jnp.allclose(y_bf16, y_ref, atol=1e-1, rtol=1e-1), "bf16 mismatch vs JAX reference"

    print("KERNEL_OK")
</pallas_src>

<mosaic_0001>
module attributes {stable_mosaic.version = 11 : i64} {
  func.func @kernel(%arg0: i32, %arg1: memref<8x16xf32, #tpu.memory_space<vmem>>, %arg2: memref<16x256xf32, #tpu.memory_space<vmem>>, %arg3: memref<1x256xf32, #tpu.memory_space<vmem>>, %arg4: memref<128x128xf32, #tpu.memory_space<vmem>>, %arg5: memref<1x128xf32, #tpu.memory_space<vmem>>, %arg6: memref<1x16xf32, #tpu.memory_space<vmem>>, %arg7: memref<1x1xf32, #tpu.memory_space<vmem>>, %arg8: memref<8x1xf32, #tpu.memory_space<vmem>>) attributes {dimension_semantics = [#tpu.dimension_semantics<parallel>], iteration_bounds = array<i64: 1>, scalar_prefetch = 0 : i64, scratch_operands = 0 : i64, tpu.core_type = #tpu.core_type<tc>, window_params = [{transform_indices = @transform_0, window_bounds = array<i64: 8, 16>}, {pipeline_mode = #tpu.pipeline_mode<synchronous>, transform_indices = @transform_1, window_bounds = array<i64: 16, 256>}, {pipeline_mode = #tpu.pipeline_mode<synchronous>, transform_indices = @transform_2, window_bounds = array<i64: 1, 256>}, {pipeline_mode = #tpu.pipeline_mode<synchronous>, transform_indices = @transform_3, window_bounds = array<i64: 128, 128>}, {pipeline_mode = #tpu.pipeline_mode<synchronous>, transform_indices = @transform_4, window_bounds = array<i64: 1, 128>}, {pipeline_mode = #tpu.pipeline_mode<synchronous>, transform_indices = @transform_5, window_bounds = array<i64: 1, 16>}, {pipeline_mode = #tpu.pipeline_mode<synchronous>, transform_indices = @transform_6, window_bounds = array<i64: 1, 1>}, {transform_indices = @transform_7, window_bounds = array<i64: 8, 1>}]} {
    %c0 = arith.constant 0 : index
    %c0_0 = arith.constant 0 : index
    %0 = vector.load %arg1[%c0, %c0_0] : memref<8x16xf32, #tpu.memory_space<vmem>>, vector<8x16xf32>
    %c0_1 = arith.constant 0 : index
    %c0_2 = arith.constant 0 : index
    %1 = vector.load %arg2[%c0_1, %c0_2] : memref<16x256xf32, #tpu.memory_space<vmem>>, vector<16x256xf32>
    %cst = arith.constant dense<0.000000e+00> : vector<8x256xf32>
    %2 = tpu.matmul %0, %1, %cst {dimension_numbers = #tpu.dot_dimension_numbers<[1], [0], [0], [1], [0, 0, 1, 1], [], []>} : vector<8x16xf32>, vector<16x256xf32>, vector<8x256xf32> -> vector<8x256xf32>
    %c0_3 = arith.constant 0 : index
    %c0_4 = arith.constant 0 : index
    %3 = vector.load %arg3[%c0_3, %c0_4] : memref<1x256xf32, #tpu.memory_space<vmem>>, vector<1x256xf32>
    %4 = vector.broadcast %3 : vector<1x256xf32> to vector<8x256xf32>
    %5 = arith.addf %2, %4 : vector<8x256xf32>
    %6 = vector.extract_strided_slice %5 {offsets = [0, 0], sizes = [8, 128], strides = [1, 1]} : vector<8x256xf32> to vector<8x128xf32>
    %cst_5 = arith.constant 0.000000e+00 : f32
    %7 = vector.broadcast %cst_5 : f32 to vector<8x128xf32>
    %8 = arith.cmpf ogt, %6, %7 : vector<8x128xf32>
    %cst_6 = arith.constant 2.000000e-01 : f32
    %9 = vector.broadcast %cst_6 : f32 to vector<8x128xf32>
    %10 = arith.mulf %9, %6 : vector<8x128xf32>
    %11 = arith.select %8, %6, %10 : vector<8x128xi1>, vector<8x128xf32>
    %12 = arith.mulf %11, %11 : vector<8x128xf32>
    %c0_7 = arith.constant 0 : index
    %c0_8 = arith.constant 0 : index
    %13 = vector.load %arg4[%c0_7, %c0_8] : memref<128x128xf32, #tpu.memory_space<vmem>>, vector<128x128xf32>
    %cst_9 = arith.constant dense<0.000000e+00> : vector<8x128xf32>
    %14 = tpu.matmul %12, %13, %cst_9 {dimension_numbers = #tpu.dot_dimension_numbers<[1], [0], [0], [1], [0, 0, 1, 1], [], []>} : vector<8x128xf32>, vector<128x128xf32>, vector<8x128xf32> -> vector<8x128xf32>
    %15 = vector.extract_strided_slice %5 {offsets = [0, 128], sizes = [8, 128], strides = [1, 1]} : vector<8x256xf32> to vector<8x128xf32>
    %16 = arith.addf %14, %15 : vector<8x128xf32>
    %cst_10 = arith.constant 0.000000e+00 : f32
    %17 = vector.broadcast %cst_10 : f32 to vector<8x128xf32>
    %18 = arith.cmpf ogt, %16, %17 : vector<8x128xf32>
    %cst_11 = arith.constant 2.000000e-01 : f32
    %19 = vector.broadcast %cst_11 : f32 to vector<8x128xf32>
    %20 = arith.mulf %19, %16 : vector<8x128xf32>
    %21 = arith.select %18, %16, %20 : vector<8x128xi1>, vector<8x128xf32>
    %c0_12 = arith.constant 0 : index
    %c0_13 = arith.constant 0 : index
    %22 = vector.load %arg5[%c0_12, %c0_13] : memref<1x128xf32, #tpu.memory_space<vmem>>, vector<1x128xf32>
    %23 = vector.broadcast %22 : vector<1x128xf32> to vector<8x128xf32>
    %24 = arith.mulf %21, %23 : vector<8x128xf32>
    %cst_14 = arith.constant dense<0.000000e+00> : vector<8xf32>
    %25 = vector.multi_reduction <add>, %24, %cst_14 [1] : vector<8x128xf32> to vector<8xf32>
    %26 = vector.shape_cast %25 : vector<8xf32> to vector<8x1xf32>
    %c0_15 = arith.constant 0 : index
    %c0_16 = arith.constant 0 : index
    %27 = vector.load %arg6[%c0_15, %c0_16] : memref<1x16xf32, #tpu.memory_space<vmem>>, vector<1x16xf32>
    %28 = vector.broadcast %27 : vector<1x16xf32> to vector<8x16xf32>
    %29 = arith.mulf %0, %28 : vector<8x16xf32>
    %cst_17 = arith.constant dense<0.000000e+00> : vector<8xf32>
    %30 = vector.multi_reduction <add>, %29, %cst_17 [1] : vector<8x16xf32> to vector<8xf32>
    %31 = vector.shape_cast %30 : vector<8xf32> to vector<8x1xf32>
    %32 = arith.addf %26, %31 : vector<8x1xf32>
    %c0_18 = arith.constant 0 : index
    %c0_19 = arith.constant 0 : index
    %33 = vector.load %arg7[%c0_18, %c0_19] : memref<1x1xf32, #tpu.memory_space<vmem>>, vector<1x1xf32>
    %34 = vector.broadcast %33 : vector<1x1xf32> to vector<8x1xf32>
    %35 = arith.addf %32, %34 : vector<8x1xf32>
    %c0_20 = arith.constant 0 : index
    %c0_21 = arith.constant 0 : index
    %36 = vector.load %arg8[%c0_20, %c0_21] : memref<8x1xf32, #tpu.memory_space<vmem>>, vector<8x1xf32>
    tpu.vector_store %arg8[%c0_20, %c0_21], %35 {strides = array<i32>} : memref<8x1xf32, #tpu.memory_space<vmem>>, vector<8x1xf32>,
    return
  }
  func.func @transform_0(%arg0: i32) -> (i32, i32) {
    %c0_i32 = arith.constant 0 : i32
    %c0_i32_0 = arith.constant 0 : i32
    return %arg0, %c0_i32 : i32, i32
  }
  func.func @transform_1(%arg0: i32) -> (i32, i32) {
    %c0_i32 = arith.constant 0 : i32
    %c0_i32_0 = arith.constant 0 : i32
    %c0_i32_1 = arith.constant 0 : i32
    return %c0_i32, %c0_i32_0 : i32, i32
  }
  func.func @transform_2(%arg0: i32) -> (i32, i32) {
    %c0_i32 = arith.constant 0 : i32
    %c0_i32_0 = arith.constant 0 : i32
    %c0_i32_1 = arith.constant 0 : i32
    return %c0_i32, %c0_i32_0 : i32, i32
  }
  func.func @transform_3(%arg0: i32) -> (i32, i32) {
    %c0_i32 = arith.constant 0 : i32
    %c0_i32_0 = arith.constant 0 : i32
    %c0_i32_1 = arith.constant 0 : i32
    return %c0_i32, %c0_i32_0 : i32, i32
  }
  func.func @transform_4(%arg0: i32) -> (i32, i32) {
    %c0_i32 = arith.constant 0 : i32
    %c0_i32_0 = arith.constant 0 : i32
    %c0_i32_1 = arith.constant 0 : i32
    return %c0_i32, %c0_i32_0 : i32, i32
  }
  func.func @transform_5(%arg0: i32) -> (i32, i32) {
    %c0_i32 = arith.constant 0 : i32
    %c0_i32_0 = arith.constant 0 : i32
    %c0_i32_1 = arith.constant 0 : i32
    return %c0_i32, %c0_i32_0 : i32, i32
  }
  func.func @transform_6(%arg0: i32) -> (i32, i32) {
    %c0_i32 = arith.constant 0 : i32
    %c0_i32_0 = arith.constant 0 : i32
    %c0_i32_1 = arith.constant 0 : i32
    return %c0_i32, %c0_i32_0 : i32, i32
  }
  func.func @transform_7(%arg0: i32) -> (i32, i32) {
    %c0_i32 = arith.constant 0 : i32
    %c0_i32_0 = arith.constant 0 : i32
    return %arg0, %c0_i32 : i32, i32
  }
}

</mosaic_0001>

<bundles_post_ra>
// kernel: tpu_custom_call.1
= control target key start
LH: loop header
LB: loop body
LE: loop exit
PB: predicated region body
PF: predicated region fallthrough
CT: control target
= control target key end

     0   :  { %s561_s0 = inlined_call_operand.hbm [shape: f32[8,16], index: 0, kind: input, shape index: {}]   ;;  %s562_s1 = inlined_call_operand.hbm [shape: f32[16,256], index: 1, kind: input, shape index: {}]   ;;  %s563_s2 = inlined_call_operand.vmem [shape: f32[1,256], index: 2, kind: input, shape index: {}]   ;;  %s564_s3 = inlined_call_operand.hbm [shape: f32[128,128], index: 3, kind: input, shape index: {}]   ;;  %s565_s4 = inlined_call_operand.vmem [shape: f32[1,128], index: 4, kind: input, shape index: {}]   ;;  %s566_s5 = inlined_call_operand.vmem [shape: f32[1,16], index: 5, kind: input, shape index: {}]   ;;  %s567_s6 = inlined_call_operand.<no memory space> [shape: f32[1,1], index: 6, kind: input, shape index: {}]   ;;  %s568_s7 = inlined_call_operand.vmem [shape: f32[8,1], index: 7, kind: output, shape index: {}]  }
   0x1   :  { %v12_v0 = vstv %s567_s6 }
   0x2   :  { %13 = vst [vmem:[#allocation2] sm:$0x1] %v12_v0 }
   0x3   :  { %14 = vsyncpa [#allocation4], 0 }
   0x4   :  { %15 = vsyncpa [#allocation6], 0  ;;  %s454_s26 = smov [#allocation5]   ;;  %s384_s30 = scalar_lea.hbm %s562_s1, 512 }
   0x5   :  { %s31_s27 = sshll.u32 %s454_s26, 4  ;;  %p385_p0 = scmp.ne.s32.totalorder %s562_s1, %s384_s30  ;;  %s32_s27 = int_to_ptr.vmem [resolvable:$true] %s31_s27 }
   0x6   :  { %p388_p1 = scmp.lt.u32.totalorder %s384_s30, %s562_s1 }
   0x8   :  { %p390_p2 = pnand %p388_p1, %p385_p0 }
   0xa   :  { %393 = shalt.err (!%p390_p2)
}
   0xb   :  { %s394_s6 = scalar_lea.vmem %s32_s27, 512  ;;  %p399_p4 = scmp.lt.s32.totalorder %s32_s27, %s32_s27 }
   0xc   :  { %p395_p3 = scmp.ne.s32.totalorder %s32_s27, %s394_s6  ;;  %p400_p5 = scmp.lt.s32.totalorder %s394_s6, %s394_s6 }
   0xe   :  { %p401_p6 = por %p400_p5, %p399_p4 }
  0x10   :  { %p402_p7 = pnand %p401_p6, %p395_p3 }
  0x12   :  { %405 = shalt.err (!%p402_p7)
}
  0x13   :  { %s455_s12 = smov 256   ;;  %s456_s13 = smov 16  }
  0x14   :  { %37 = dma.hbm_to_vmem [thread:$0]  %s562_s1, 512, %s32_s27, [#allocation6], %s455_s12, %s455_s12, %s456_s13  }
  0x15   :  { %s457_s16 = smov [#allocation3]   ;;  %s458_s18 = smov [#allocation7]  }
  0x16   :  { %s22_s17 = sshll.u32 %s457_s16, 4  ;;  %s45_s19 = sshll.u32 %s458_s18, 4  ;;  %s23_s17 = int_to_ptr.vmem [resolvable:$true] %s22_s17  ;;  %s46_s19 = int_to_ptr.vmem [resolvable:$true] %s45_s19 }
  0x17   :  { %s406_s22 = scalar_lea.hbm %s561_s0, 128 }
  0x18   :  { %p407_p8 = scmp.ne.s32.totalorder %s561_s0, %s406_s22  ;;  %p410_p9 = scmp.lt.u32.totalorder %s406_s22, %s561_s0 }
  0x1a   :  { %p412_p10 = pnand %p410_p9, %p407_p8 }
  0x1c   :  { %415 = shalt.err (!%p412_p10)
}
  0x1d   :  { %s416_s1 = scalar_lea.vmem %s23_s17, 128  ;;  %p421_p12 = scmp.lt.s32.totalorder %s23_s17, %s23_s17 }
  0x1e   :  { %p417_p11 = scmp.ne.s32.totalorder %s23_s17, %s416_s1  ;;  %p422_p13 = scmp.lt.s32.totalorder %s416_s1, %s416_s1 }
  0x20   :  { %p423_p0 = por %p422_p13, %p421_p12 }
  0x22   :  { %p424_p1 = pnand %p423_p0, %p417_p11 }
  0x24   :  { %427 = shalt.err (!%p424_p1)
}
  0x25   :  { %25 = dma.hbm_to_vmem [thread:$0]  %s561_s0, 128, %s23_s17, [#allocation4]  }
  0x26   :  { %s428_s8 = scalar_lea.hbm %s564_s3, 2048 }
  0x27   :  { %p429_p2 = scmp.ne.s32.totalorder %s564_s3, %s428_s8  ;;  %p432_p3 = scmp.lt.u32.totalorder %s428_s8, %s564_s3 }
  0x29   :  { %p434_p4 = pnand %p432_p3, %p429_p2 }
  0x2b   :  { %437 = shalt.err (!%p434_p4)
}
  0x2c   :  { %s438_s12 = scalar_lea.vmem %s46_s19, 2048  ;;  %p443_p6 = scmp.lt.s32.totalorder %s46_s19, %s46_s19 }
  0x2d   :  { %p439_p5 = scmp.ne.s32.totalorder %s46_s19, %s438_s12  ;;  %p444_p7 = scmp.lt.s32.totalorder %s438_s12, %s438_s12 }
  0x2f   :  { %p445_p8 = por %p444_p7, %p443_p6 }
  0x31   :  { %p446_p9 = pnand %p445_p8, %p439_p5 }
  0x33   :  { %449 = shalt.err (!%p446_p9)
}
  0x34   :  { %s459_s0 = smov 128   ;;  %s460_s13 = smov 8  }
  0x35   :  { %51 = dma.hbm_to_vmem [thread:$0]  %s564_s3, 2048, %s46_s19, [#allocation6], %s459_s0, %s459_s0, %s460_s13  }
  0x36   :  { %450 = dma.done.wait [#allocation4], 128  }
  0x37   :  { %451 = vsyncadd [#allocation4], 4294967168 }
  0x38   :  { %452 = dma.done.wait [#allocation6], 2560  }
  0x39   :  { %453 = vsyncadd [#allocation6], 4294964736  ;;  %v461_v1 = vmov 0.0   ;;  %v462_v2 = vmov 0.0|0.0   ;;  %v69_v3 = vld [vmem:[#allocation5 + $0x8] sm:$0xff]  ;;  %v71_v4 = vld [vmem:[#allocation5 + $0x18] sm:$0xff]  ;;  %v74_v34 = vlaneseq }
  0x3a   :  { %152 = vmatprep.mubr.f32.mxu0 %v461_v1  ;;  %350 = vmatprep.subr.bf16.mxu1 %v462_v2  ;;  %v68_v5 = vld [vmem:[#allocation5] sm:$0xff]  ;;  %v346_v6 = vpack.c.bf16 %v71_v4, %v69_v3  ;;  %v70_v7 = vld [vmem:[#allocation5 + $0x10] sm:$0xff]  ;;  %v164_v10 = vld [vmem:[#allocation7 + $0x8] sm:$0xff]  ;;  %vm84_vm0 = vcmask 130048   ;;  %vm463_vm1 = vmmov 0   ;;  %vm282_vm4 = vcmask 7168  }
  0x3b   :  { %v163_v8 = vld [vmem:[#allocation7] sm:$0xff]  ;;  %v348_v9 = vpack.c.bf16 %v70_v7, %v68_v5  ;;  %v165_v11 = vld [vmem:[#allocation7 + $0x10] sm:$0xff]  ;;  %v166_v12 = vld [vmem:[#allocation7 + $0x18] sm:$0xff]  ;;  %343 = vmatprep.mubr.msk.f32.mxu1 %vm463_vm1, %v461_v1  ;;  %v75_v35 = vshrl.u32 %v74_v34, 7 }
  0x3c   :  { %347 = vmatprep.subr.bf16.mxu0 %v346_v6  ;;  %v351_v13 = vpack.c.bf16 %v164_v10, %v163_v8  ;;  %v543_v14 = vld [vmem:[#allocation3] sm:$0xff]  ;;  %v354_v15 = vpack.c.bf16 %v166_v12, %v165_v11  ;;  %v167_v16 = vld [vmem:[#allocation7 + $0x20] sm:$0xff]  ;;  %v168_v17 = vld [vmem:[#allocation7 + $0x28] sm:$0xff] }
  0x3d   :  { %349 = vmatpush1.bf16.msra.mxu0 %v348_v9  ;;  %v357_v18 = vpack.c.bf16 %v168_v17, %v167_v16  ;;  %v169_v19 = vld [vmem:[#allocation7 + $0x30] sm:$0xff]  ;;  %v170_v20 = vld [vmem:[#allocation7 + $0x38] sm:$0xff]  ;;  %v171_v22 = vld [vmem:[#allocation7 + $0x40] sm:$0xff]  ;;  %v76_v36 = vsub.s32 0, %v75_v35  ;;  %v80_v45 = vsub.s32 1, %v75_v35 }
  0x3e   :  { %352 = vmatpush3.bf16.msra.mxu1 %v351_v13  ;;  %v360_v21 = vpack.c.bf16 %v170_v20, %v169_v19  ;;  %v172_v23 = vld [vmem:[#allocation7 + $0x48] sm:$0xff]  ;;  %v173_v25 = vld [vmem:[#allocation7 + $0x50] sm:$0xff]  ;;  %v174_v26 = vld [vmem:[#allocation7 + $0x58] sm:$0xff] }
  0x3f   :  { %353 = vmatprep.subr.bf16.mxu1 %v462_v2  ;;  %v363_v24 = vpack.c.bf16 %v172_v23, %v171_v22  ;;  %v366_v27 = vpack.c.bf16 %v174_v26, %v173_v25  ;;  %v175_v28 = vld [vmem:[#allocation7 + $0x60] sm:$0xff]  ;;  %v176_v29 = vld [vmem:[#allocation7 + $0x68] sm:$0xff]  ;;  %v177_v31 = vld [vmem:[#allocation7 + $0x70] sm:$0xff] }
  0x40   :  { %290 = vmatmul.mubr.msk.f32.vlgmr.msra.gmra.mrb[0].mxu0 %vm84_vm0, %v543_v14  ;;  %v369_v30 = vpack.c.bf16 %v176_v29, %v175_v28  ;;  %v178_v32 = vld [vmem:[#allocation7 + $0x78] sm:$0xff]  ;;  %v292_v51 = vld [vmem:[%s566_s5] ss:$0 sm:$0xff] }
  0x41   :  { %v372_v33 = vpack.c.bf16 %v178_v32, %v177_v31  ;;  %v72_v37 = vld [vmem:[%s563_s2] sm:$0x3]  ;;  %v269_v55 = vmul.f32 %v292_v51, %v543_v14 }
  0x42   :  { %355 = vmatpush3.bf16.msra.mxu1 %v354_v15  ;;  %v77_v38 = vrot.slane %v72_v37, %v76_v36  ;;  %v81_v46 = vrot.slane %v72_v37, %v80_v45  ;;  %v291_v53 = vld [vmem:[%s565_s4] ss:$0 sm:$0xff] }
  0x43   :  { %356 = vmatprep.subr.bf16.mxu1 %v462_v2  ;;  %v270_v57 = vsel %vm84_vm0, %v269_v55, 0.0  ;;  %v293_v59 = vld [vmem:[#allocation2] ss:$0 sm:$0xff] }
  0x46   :  { %358 = vmatpush3.bf16.msra.mxu1 %v357_v18 }
  0x47   :  { %359 = vmatprep.subr.bf16.mxu1 %v462_v2 }
  0x4a   :  { %361 = vmatpush3.bf16.msra.mxu1 %v360_v21 }
  0x4b   :  { %362 = vmatprep.subr.bf16.mxu1 %v462_v2 }
  0x4e   :  { %364 = vmatpush3.bf16.msra.mxu1 %v363_v24 }
  0x4f   :  { %365 = vmatprep.subr.bf16.mxu1 %v462_v2 }
  0x52   :  { %367 = vmatpush3.bf16.msra.mxu1 %v366_v27 }
  0x53   :  { %368 = vmatprep.subr.bf16.mxu1 %v462_v2 }
  0x56   :  { %370 = vmatpush3.bf16.msra.mxu1 %v369_v30 }
  0x57   :  { %371 = vmatprep.subr.bf16.mxu1 %v462_v2 }
  0x5a   :  { %373 = vmatpush3.bf16.msra.mxu1 %v372_v33 }
 0x113   :  { %v154_v39 = vpop.f32.mrb[0].mxu0 }
 0x114   :  { %v155_v40 = vadd.f32 %v154_v39, %v77_v38  ;;  %v156_v41 = vpop.f32.mrb[1].mxu0 }
 0x115   :  { %v157_v47 = vadd.f32 %v156_v41, %v81_v46 }
 0x116   :  { %vm159_vm2 = vcmp.gt.f32.partialorder %v155_v40, 0.0  ;;  %v160_v42 = vmul.f32 0.2, %v155_v40 }
 0x118   :  { %v161_v43 = vsel %vm159_vm2, %v155_v40, %v160_v42 }
 0x119   :  { %v162_v44 = vmul.f32 %v161_v43, %v161_v43 }
 0x11b   :  { %344 = vmatmul.mubr.f32.vlgmr.msra.gmra.mrb[0].mxu1 %v162_v44 }
 0x1ee   :  { %v245_v48 = vpop.f32.mrb[0].mxu1 }
 0x1ef   :  { %v246_v49 = vadd.f32 %v245_v48, %v157_v47  ;;  %v345_v50 = vpop.f32.mrb[1].mxu1 }
 0x1f1   :  { %v250_v52 = vmul.f32 0.2, %v246_v49  ;;  %vm249_vm3 = vcmp.gt.f32.partialorder %v246_v49, 0.0 }
 0x1f3   :  { %v251_v54 = vsel %vm249_vm3, %v246_v49, %v250_v52 }
 0x1f4   :  { %v259_v56 = vmul.f32 %v291_v53, %v251_v54 }
 0x1f6   :  { %260 = vadd.xlane.f32.xlu0 %v259_v56 }
 0x1fa   :  { %271 = vadd.xlane.f32.xlu0 %v270_v57 }
 0x283   :  { %v261_v58 = vpop.xlane.xlu0 %260 }
 0x287   :  { %v272_v60 = vpop.xlane.xlu0 %271 }
 0x288   :  { %v273_v61 = vadd.f32 %v272_v60, %v261_v58 }
 0x28a   :  { %v281_v62 = vadd.f32 %v293_v59, %v273_v61 }
 0x28c   :  { %283 = vst.msk [vmem:[%s568_s7] sm:$0xff] %vm282_vm4, %v281_v62 }
 0x28d   :  { %288 = vsyncpa [#allocation4], 1 }
 0x28e   :  { %289 = vsyncpa [#allocation6], 1 }

</bundles_post_ra>
